<compile_context>
chip_gen: v5e
topology: v5e:2x2
jax: 0.10.0
libtpu: 0.0.40
codegen_flags: <defaults>
</compile_context>

<pallas_src>
import functools

import numpy as np
import jax
import jax.numpy as jnp
from jax.experimental import pallas as pl
from jax.experimental.pallas import tpu as pltpu

# Matches the PyTorch module's constants
NUM_ATOM_TYPE = 119
NUM_CHIRALITY_TAG = 5
NUM_DEGREE = 12
NUM_FORMAL_CHARGE = 12
NUM_HYBRIDIZATION = 7
NUM_IMPLICIT_VALENCE = 8
NUM_NUMH = 10

# Same order as AtomEncoder.__init__
FULL_ATOM_FEATURE_DIMS = [
    NUM_ATOM_TYPE,
    NUM_FORMAL_CHARGE,
    NUM_CHIRALITY_TAG,
    NUM_HYBRIDIZATION,
    NUM_NUMH,
    NUM_IMPLICIT_VALENCE,
    NUM_DEGREE,
]


def _round_up(x, m):
    return ((x + m - 1) // m) * m


def _pack_features(sizes, chunk_lanes=128):
    """Greedy first-fit packing of per-feature vocab ranges into 128-lane chunks.

    Returns (chunks, rel_offsets):
      chunks[c]       = tuple of feature indices whose vocab range lives in chunk c
      rel_offsets[i]  = offset of feature i's vocab range inside its chunk
    The ranges are disjoint, so OR-ing per-feature one-hots == summing them.
    """
    # TODO(synk): a feature with vocab > chunk_lanes would need multi-chunk compares.
    assert all(s <= chunk_lanes for s in sizes)
    chunk_feats, chunk_fill = [], []
    rel = [0] * len(sizes)
    for i, s in enumerate(sizes):
        for c in range(len(chunk_feats)):
            if chunk_fill[c] + s <= chunk_lanes:
                rel[i] = chunk_fill[c]
                chunk_feats[c].append(i)
                chunk_fill[c] += s
                break
        else:
            rel[i] = 0
            chunk_feats.append([i])
            chunk_fill.append(s)
    return tuple(tuple(c) for c in chunk_feats), rel


def atom_encoder_kernel(x_ref, table_ref, out_ref, *, chunk_features, chunk_lanes):
    """x_ref:     (TN, F) int32, chunk-relative vocab offsets already folded in.
       table_ref: (num_chunks * chunk_lanes, emb_dim) f32 packed embedding tables.
       out_ref:   (TN, emb_dim) f32 = sum_i Emb_i(x[:, i])

    chunk_features: static tuple; chunk_features[c] lists the feature columns whose
    (disjoint) vocab range lives in 128-lane chunk c of the packed table.
    """
    x = x_ref[...]                                               # (TN, F) int32
    iota = jax.lax.broadcasted_iota(jnp.int32, (1, chunk_lanes), 1)  # (1, 128)

    acc = None
    for c, feats in enumerate(chunk_features):                   # static unroll
        hot = None
        for i in feats:
            eq = x[:, i:i + 1] == iota                           # (TN, 128) bool
            hot = eq if hot is None else jnp.logical_or(hot, eq)
        counts = hot.astype(jnp.float32)                         # one cast per chunk
        part = jnp.dot(counts,
                       table_ref[c * chunk_lanes:(c + 1) * chunk_lanes, :],
                       preferred_element_type=jnp.float32)       # (TN, emb_dim)
        acc = part if acc is None else acc + part
    out_ref[...] = acc


def init_atom_encoder_params(key, emb_dim):
    """Deterministic xavier_uniform init, same shapes as the torch module."""
    tables = []
    for i, dim in enumerate(FULL_ATOM_FEATURE_DIMS):
        k = jax.random.fold_in(key, i)
        bound = float(np.sqrt(6.0 / (dim + emb_dim)))
        tables.append(
            jax.random.uniform(k, (dim, emb_dim), jnp.float32, -bound, bound))
    return tables


def atom_encoder(x, tables, *, tile_n=2048, chunk_lanes=128):
    """x: (N, 7) integer categorical features. Returns (N, emb_dim) float32."""
    sizes = [int(t.shape[0]) for t in tables]
    emb_dim = int(tables[0].shape[1])

    chunks, rel = _pack_features(sizes, chunk_lanes)
    v_pad = len(chunks) * chunk_lanes                            # K, lane-aligned

    # Pack the tables: feature i's rows live at chunk_start + rel[i]; the gaps are
    # zero so any stray index contributes nothing.
    pieces = []
    for c, feats in enumerate(chunks):
        pos = 0
        for i in feats:
            if rel[i] > pos:
                pieces.append(jnp.zeros((rel[i] - pos, emb_dim), jnp.float32))
            pieces.append(tables[i].astype(jnp.float32))
            pos = rel[i] + sizes[i]
        if pos < chunk_lanes:
            pieces.append(jnp.zeros((chunk_lanes - pos, emb_dim), jnp.float32))
    big_table = jnp.concatenate(pieces, axis=0)                  # (v_pad, emb_dim)

    n, f = x.shape
    # Balanced, sublane-aligned tiles: amortize the per-grid-step overhead and keep
    # the ("parallel",) N axis evenly splittable across v7x's two TensorCores.
    num_tiles = max(1, pl.cdiv(n, tile_n))
    tn = _round_up(pl.cdiv(n, num_tiles), 8)
    n_pad = num_tiles * tn

    # Fold chunk-relative offsets into the int32 cast we already pay for
    # (no extra HBM array; drops the 7 in-kernel adds).
    x32 = x.astype(jnp.int32) + jnp.asarray(rel, jnp.int32)[None, :]
    if n_pad != n:
        # Padded rows produce (discarded) embeddings for index 0 of each chunk.
        x32 = jnp.pad(x32, ((0, n_pad - n), (0, 0)))

    kernel = functools.partial(atom_encoder_kernel,
                               chunk_features=chunks, chunk_lanes=chunk_lanes)

    cost = pl.CostEstimate(
        flops=2 * n_pad * v_pad * emb_dim,
        transcendentals=0,
        bytes_accessed=(n_pad * f * 4) + (v_pad * emb_dim * 4) + (n_pad * emb_dim * 4),
    )

    out = pl.pallas_call(
        kernel,
        out_shape=jax.ShapeDtypeStruct((n_pad, emb_dim), jnp.float32),
        grid=(num_tiles,),
        in_specs=[
            pl.BlockSpec((tn, f), lambda i: (i, 0)),              # feature tile
            pl.BlockSpec((v_pad, emb_dim), lambda i: (0, 0)),     # table, VMEM-resident
        ],
        # Full-dim last block -> no column padding, no post-kernel column slice.
        out_specs=pl.BlockSpec((tn, emb_dim), lambda i: (i, 0)),
        compiler_params=pltpu.CompilerParams(
            dimension_semantics=("parallel",)),                   # megacore-shardable
        cost_estimate=cost,
    )(x32, big_table)

    return out if n_pad == n else out[:n]


def atom_encoder_ref(x, tables):
    """Pure-JAX reference matching the PyTorch forward."""
    acc = 0
    for i, t in enumerate(tables):
        acc = acc + t[x[:, i]]
    return acc


if __name__ == "__main__":
    key = jax.random.PRNGKey(0)
    emb_dim = 32
    n_atoms = 8

    tables = init_atom_encoder_params(key, emb_dim)

    # Build a small (N, 7) integer feature matrix, each column within its vocab.
    cols = []
    for i, dim in enumerate(FULL_ATOM_FEATURE_DIMS):
        k = jax.random.fold_in(jax.random.PRNGKey(1), i)
        cols.append(jax.random.randint(k, (n_atoms, 1), 0, dim, dtype=jnp.int32))
    x = jnp.concatenate(cols, axis=1)                             # (8, 7) int32

    out = atom_encoder(x, tables)
    out = jax.block_until_ready(out)

    ref = atom_encoder_ref(x, tables)
    np.testing.assert_allclose(np.asarray(out), np.asarray(ref),
                               rtol=1e-5, atol=1e-5)
    print("KERNEL_OK")
</pallas_src>

<mosaic_0001>
module attributes {stable_mosaic.version = 11 : i64} {
  func.func @atom_encoder_kernel(%arg0: i32, %arg1: memref<8x7xi32, #tpu.memory_space<vmem>>, %arg2: memref<256x32xf32, #tpu.memory_space<vmem>>, %arg3: memref<8x32xf32, #tpu.memory_space<vmem>>) attributes {dimension_semantics = [#tpu.dimension_semantics<parallel>], iteration_bounds = array<i64: 1>, scalar_prefetch = 0 : i64, scratch_operands = 0 : i64, tpu.core_type = #tpu.core_type<tc>, window_params = [{transform_indices = @transform_0, window_bounds = array<i64: 8, 7>}, {pipeline_mode = #tpu.pipeline_mode<synchronous>, transform_indices = @transform_1, window_bounds = array<i64: 256, 32>}, {transform_indices = @transform_2, window_bounds = array<i64: 8, 32>}]} {
    %c0 = arith.constant 0 : index
    %c0_0 = arith.constant 0 : index
    %0 = vector.load %arg1[%c0, %c0_0] : memref<8x7xi32, #tpu.memory_space<vmem>>, vector<8x7xi32>
    %1 = tpu.iota {dimensions = array<i32: 1>} : vector<1x128xi32>
    %2 = vector.extract_strided_slice %0 {offsets = [0, 0], sizes = [8, 1], strides = [1, 1]} : vector<8x7xi32> to vector<8x1xi32>
    %3 = vector.broadcast %2 : vector<8x1xi32> to vector<8x128xi32>
    %4 = vector.broadcast %1 : vector<1x128xi32> to vector<8x128xi32>
    %5 = arith.cmpi eq, %3, %4 : vector<8x128xi32>
    %6 = vector.extract_strided_slice %0 {offsets = [0, 2], sizes = [8, 1], strides = [1, 1]} : vector<8x7xi32> to vector<8x1xi32>
    %7 = vector.broadcast %6 : vector<8x1xi32> to vector<8x128xi32>
    %8 = vector.broadcast %1 : vector<1x128xi32> to vector<8x128xi32>
    %9 = arith.cmpi eq, %7, %8 : vector<8x128xi32>
    %10 = arith.ori %5, %9 : vector<8x128xi1>
    %11 = arith.extui %10 : vector<8x128xi1> to vector<8x128xi32>
    %12 = arith.sitofp %11 : vector<8x128xi32> to vector<8x128xf32>
    %c0_1 = arith.constant 0 : index
    %c0_2 = arith.constant 0 : index
    %13 = vector.load %arg2[%c0_1, %c0_2] : memref<256x32xf32, #tpu.memory_space<vmem>>, vector<128x32xf32>
    %cst = arith.constant dense<0.000000e+00> : vector<8x32xf32>
    %14 = tpu.matmul %12, %13, %cst {dimension_numbers = #tpu.dot_dimension_numbers<[1], [0], [0], [1], [0, 0, 1, 1], [], []>} : vector<8x128xf32>, vector<128x32xf32>, vector<8x32xf32> -> vector<8x32xf32>
    %15 = vector.extract_strided_slice %0 {offsets = [0, 1], sizes = [8, 1], strides = [1, 1]} : vector<8x7xi32> to vector<8x1xi32>
    %16 = vector.broadcast %15 : vector<8x1xi32> to vector<8x128xi32>
    %17 = vector.broadcast %1 : vector<1x128xi32> to vector<8x128xi32>
    %18 = arith.cmpi eq, %16, %17 : vector<8x128xi32>
    %19 = vector.extract_strided_slice %0 {offsets = [0, 3], sizes = [8, 1], strides = [1, 1]} : vector<8x7xi32> to vector<8x1xi32>
    %20 = vector.broadcast %19 : vector<8x1xi32> to vector<8x128xi32>
    %21 = vector.broadcast %1 : vector<1x128xi32> to vector<8x128xi32>
    %22 = arith.cmpi eq, %20, %21 : vector<8x128xi32>
    %23 = arith.ori %18, %22 : vector<8x128xi1>
    %24 = vector.extract_strided_slice %0 {offsets = [0, 4], sizes = [8, 1], strides = [1, 1]} : vector<8x7xi32> to vector<8x1xi32>
    %25 = vector.broadcast %24 : vector<8x1xi32> to vector<8x128xi32>
    %26 = vector.broadcast %1 : vector<1x128xi32> to vector<8x128xi32>
    %27 = arith.cmpi eq, %25, %26 : vector<8x128xi32>
    %28 = arith.ori %23, %27 : vector<8x128xi1>
    %29 = vector.extract_strided_slice %0 {offsets = [0, 5], sizes = [8, 1], strides = [1, 1]} : vector<8x7xi32> to vector<8x1xi32>
    %30 = vector.broadcast %29 : vector<8x1xi32> to vector<8x128xi32>
    %31 = vector.broadcast %1 : vector<1x128xi32> to vector<8x128xi32>
    %32 = arith.cmpi eq, %30, %31 : vector<8x128xi32>
    %33 = arith.ori %28, %32 : vector<8x128xi1>
    %34 = vector.extract_strided_slice %0 {offsets = [0, 6], sizes = [8, 1], strides = [1, 1]} : vector<8x7xi32> to vector<8x1xi32>
    %35 = vector.broadcast %34 : vector<8x1xi32> to vector<8x128xi32>
    %36 = vector.broadcast %1 : vector<1x128xi32> to vector<8x128xi32>
    %37 = arith.cmpi eq, %35, %36 : vector<8x128xi32>
    %38 = arith.ori %33, %37 : vector<8x128xi1>
    %39 = arith.extui %38 : vector<8x128xi1> to vector<8x128xi32>
    %40 = arith.sitofp %39 : vector<8x128xi32> to vector<8x128xf32>
    %c128 = arith.constant 128 : index
    %c0_3 = arith.constant 0 : index
    %41 = vector.load %arg2[%c128, %c0_3] : memref<256x32xf32, #tpu.memory_space<vmem>>, vector<128x32xf32>
    %cst_4 = arith.constant dense<0.000000e+00> : vector<8x32xf32>
    %42 = tpu.matmul %40, %41, %cst_4 {dimension_numbers = #tpu.dot_dimension_numbers<[1], [0], [0], [1], [0, 0, 1, 1], [], []>} : vector<8x128xf32>, vector<128x32xf32>, vector<8x32xf32> -> vector<8x32xf32>
    %43 = arith.addf %14, %42 : vector<8x32xf32>
    %c0_5 = arith.constant 0 : index
    %c0_6 = arith.constant 0 : index
    %44 = vector.load %arg3[%c0_5, %c0_6] : memref<8x32xf32, #tpu.memory_space<vmem>>, vector<8x32xf32>
    tpu.vector_store %arg3[%c0_5, %c0_6], %43 {strides = array<i32>} : memref<8x32xf32, #tpu.memory_space<vmem>>, vector<8x32xf32>,
    return
  }
  func.func @transform_0(%arg0: i32) -> (i32, i32) {
    %c0_i32 = arith.constant 0 : i32
    %c0_i32_0 = arith.constant 0 : i32
    return %arg0, %c0_i32 : i32, i32
  }
  func.func @transform_1(%arg0: i32) -> (i32, i32) {
    %c0_i32 = arith.constant 0 : i32
    %c0_i32_0 = arith.constant 0 : i32
    %c0_i32_1 = arith.constant 0 : i32
    return %c0_i32, %c0_i32_0 : i32, i32
  }
  func.func @transform_2(%arg0: i32) -> (i32, i32) {
    %c0_i32 = arith.constant 0 : i32
    %c0_i32_0 = arith.constant 0 : i32
    return %arg0, %c0_i32 : i32, i32
  }
}

</mosaic_0001>

<bundles_post_ra>
// kernel: tpu_custom_call.1
= control target key start
LH: loop header
LB: loop body
LE: loop exit
PB: predicated region body
PF: predicated region fallthrough
CT: control target
= control target key end

     0   :  { %v189_v2 = vmov 4   ;;  %v190_v3 = vmov 1   ;;  %v191_v6 = vmov 6   ;;  %s316_s0 = inlined_call_operand.vmem [shape: s32[8,7], index: 0, kind: input, shape index: {}]   ;;  %s317_s1 = inlined_call_operand.vmem [shape: f32[256,32], index: 1, kind: input, shape index: {}]   ;;  %s318_s2 = inlined_call_operand.hbm [shape: f32[8,32], index: 2, kind: output, shape index: {}]  }
   0x1   :  { %v12_v0 = vld [vmem:[%s316_s0] sm:$0xff]  ;;  %v83_v1 = vld [vmem:[%s317_s1 + $0xf8] sm:$0xff]  ;;  %157 = vset.pattern.permute.xlu1 %v189_v2  ;;  %155 = vset.pattern.permute.xlu0 %v190_v3  ;;  %v82_v5 = vld [vmem:[%s317_s1 + $0xf0] sm:$0xff] }
   0x2   :  { %v41_v4 = vld [vmem:[%s317_s1 + $0x78] sm:$0xff]  ;;  %52 = vperm.xlu1 %157, %v12_v0   ;;  %43 = vperm.xlu0 %155, %v12_v0   ;;  %v40_v7 = vld [vmem:[%s317_s1 + $0x70] sm:$0xff]  ;;  %v81_v8 = vld [vmem:[%s317_s1 + $0xe8] sm:$0xff] }
   0x3   :  { %159 = vset.pattern.permute.xlu2 %v191_v6  ;;  %84 = vmatpush.msra.mxu0 %v83_v1  ;;  %v39_v9 = vld [vmem:[%s317_s1 + $0x68] sm:$0xff] }
   0x4   :  { %62 = vperm.xlu2 %159, %v12_v0   ;;  %104 = vmatpush.msra.mxu1 %v41_v4 }
   0x5   :  { %85 = vmatpush.msra.mxu0 %v82_v5 }
   0x6   :  { %7 = vsyncpa [#allocation3], 0  ;;  %v80_v10 = vld [vmem:[%s317_s1 + $0xe0] sm:$0xff]  ;;  %105 = vmatpush.msra.mxu1 %v40_v7  ;;  %v79_v11 = vld [vmem:[%s317_s1 + $0xd8] sm:$0xff]  ;;  %v192_v12 = vmov 5   ;;  %v193_v13 = vmov 3   ;;  %v13_v42 = vlaneseq }
   0x7   :  { %86 = vmatpush.msra.mxu0 %v81_v8  ;;  %v38_v14 = vld [vmem:[%s317_s1 + $0x60] sm:$0xff]  ;;  %v78_v15 = vld [vmem:[%s317_s1 + $0xd0] sm:$0xff]  ;;  %v194_v16 = vmov 0   ;;  %v37_v17 = vld [vmem:[%s317_s1 + $0x58] sm:$0xff]  ;;  %v195_v21 = vmov 2   ;;  %v196_v48 = vmov 0.0  }
   0x8   :  { %106 = vmatpush.msra.mxu1 %v39_v9  ;;  %v77_v18 = vld [vmem:[%s317_s1 + $0xc8] sm:$0xff]  ;;  %v36_v19 = vld [vmem:[%s317_s1 + $0x50] sm:$0xff]  ;;  %v76_v20 = vld [vmem:[%s317_s1 + $0xc0] sm:$0xff]  ;;  %v14_v44 = vand.u32 127, %v13_v42  ;;  %v197_v51 = vmov 1.0   ;;  %s133_s19 = sshll.u32 %s318_s2, 4  ;;  %s134_s19 = int_to_ptr.hbm [resolvable:$true] %s133_s19 }
   0x9   :  { %87 = vmatpush.msra.mxu0 %v80_v10  ;;  %v75_v22 = vld [vmem:[%s317_s1 + $0xb8] sm:$0xff]  ;;  %v35_v23 = vld [vmem:[%s317_s1 + $0x48] sm:$0xff]  ;;  %v74_v24 = vld [vmem:[%s317_s1 + $0xb0] sm:$0xff]  ;;  %vm124_vm12 = vcmask 261120  }
   0xa   :  { %158 = vset.pattern.permute.xlu1 %v192_v12  ;;  %156 = vset.pattern.permute.xlu0 %v193_v13  ;;  %v34_v25 = vld [vmem:[%s317_s1 + $0x40] sm:$0xff]  ;;  %v73_v26 = vld [vmem:[%s317_s1 + $0xa8] sm:$0xff]  ;;  %v33_v27 = vld [vmem:[%s317_s1 + $0x38] sm:$0xff] }
   0xb   :  { %57 = vperm.xlu1 %158, %v12_v0   ;;  %47 = vperm.xlu0 %156, %v12_v0   ;;  %v72_v28 = vld [vmem:[%s317_s1 + $0xa0] sm:$0xff]  ;;  %v32_v29 = vld [vmem:[%s317_s1 + $0x30] sm:$0xff]  ;;  %v71_v30 = vld [vmem:[%s317_s1 + $0x98] sm:$0xff] }
   0xc   :  { %160 = vset.pattern.permute.xlu2 %v194_v16  ;;  %88 = vmatpush.msra.mxu0 %v79_v11  ;;  %v31_v31 = vld [vmem:[%s317_s1 + $0x28] sm:$0xff]  ;;  %v70_v32 = vld [vmem:[%s317_s1 + $0x90] sm:$0xff]  ;;  %v30_v33 = vld [vmem:[%s317_s1 + $0x20] sm:$0xff] }
   0xd   :  { %16 = vperm.xlu2 %160, %v12_v0   ;;  %107 = vmatpush.msra.mxu1 %v38_v14  ;;  %v69_v34 = vld [vmem:[%s317_s1 + $0x88] sm:$0xff]  ;;  %v29_v35 = vld [vmem:[%s317_s1 + $0x18] sm:$0xff]  ;;  %v68_v36 = vld [vmem:[%s317_s1 + $0x80] sm:$0xff] }
   0xe   :  { %89 = vmatpush.msra.mxu0 %v78_v15  ;;  %v28_v37 = vld [vmem:[%s317_s1 + $0x10] sm:$0xff]  ;;  %v27_v38 = vld [vmem:[%s317_s1 + $0x8] sm:$0xff]  ;;  %v26_v39 = vld [vmem:[%s317_s1] sm:$0xff]  ;;  %s198_s1 = smov [#allocation2]  }
   0xf   :  { %108 = vmatpush.msra.mxu1 %v37_v17  ;;  %s131_s0 = sshll.u32 %s198_s1, 4  ;;  %s132_s0 = int_to_ptr.vmem [resolvable:$true] %s131_s0 }
  0x10   :  { %90 = vmatpush.msra.mxu0 %v77_v18 }
  0x11   :  { %109 = vmatpush.msra.mxu1 %v36_v19 }
  0x12   :  { %91 = vmatpush.msra.mxu0 %v76_v20 }
  0x13   :  { %161 = vset.pattern.permute.xlu1 %v195_v21  ;;  %162 = vset.pattern.permute.xlu0 %v191_v6 }
  0x14   :  { %20 = vperm.xlu1 %161, %v12_v0   ;;  %92 = vmatpush.msra.mxu0 %v75_v22 }
  0x15   :  { %110 = vmatpush.msra.mxu1 %v35_v23 }
  0x16   :  { %93 = vmatpush.msra.mxu0 %v74_v24 }
  0x17   :  { %111 = vmatpush.msra.mxu1 %v34_v25 }
  0x18   :  { %94 = vmatpush.msra.mxu0 %v73_v26 }
  0x19   :  { %112 = vmatpush.msra.mxu1 %v33_v27 }
  0x1a   :  { %95 = vmatpush.msra.mxu0 %v72_v28 }
  0x1b   :  { %113 = vmatpush.msra.mxu1 %v32_v29 }
  0x1c   :  { %96 = vmatpush.msra.mxu0 %v71_v30 }
  0x1d   :  { %114 = vmatpush.msra.mxu1 %v31_v31 }
  0x1e   :  { %97 = vmatpush.msra.mxu0 %v70_v32 }
  0x1f   :  { %115 = vmatpush.msra.mxu1 %v30_v33 }
  0x20   :  { %98 = vmatpush.msra.mxu0 %v69_v34 }
  0x21   :  { %116 = vmatpush.msra.mxu1 %v29_v35 }
  0x22   :  { %99 = vmatpush.msra.mxu0 %v68_v36 }
  0x23   :  { %117 = vmatpush.msra.mxu1 %v28_v37 }
  0x25   :  { %118 = vmatpush.msra.mxu1 %v27_v38 }
  0x27   :  { %119 = vmatpush.msra.mxu1 %v26_v39 }
  0x5e   :  { %v63_v43 = vpop.permute.xlu2 %62 }
  0x5f   :  { %vm64_vm6 = vcmp.eq.s32.totalorder %v63_v43, %v14_v44 }
  0x67   :  { %v17_v47 = vpop.permute.xlu2 %16 }
  0x68   :  { %vm18_vm9 = vcmp.eq.s32.totalorder %v17_v47, %v14_v44 }
  0x74   :  { %v53_v40 = vpop.permute.xlu1 %52  ;;  %v44_v41 = vpop.permute.xlu0 %43 }
  0x75   :  { %vm45_vm0 = vcmp.eq.s32.totalorder %v44_v41, %v14_v44  ;;  %vm54_vm2 = vcmp.eq.s32.totalorder %v53_v40, %v14_v44 }
  0x7d   :  { %v58_v45 = vpop.permute.xlu1 %57  ;;  %v48_v46 = vpop.permute.xlu0 %47 }
  0x7e   :  { %vm49_vm1 = vcmp.eq.s32.totalorder %v48_v46, %v14_v44  ;;  %vm59_vm4 = vcmp.eq.s32.totalorder %v58_v45, %v14_v44 }
  0x7f   :  { %vm50_vm3 = vmor %vm45_vm0, %vm49_vm1 }
  0x80   :  { %vm55_vm5 = vmor %vm50_vm3, %vm54_vm2 }
  0x81   :  { %vm60_vm7 = vmor %vm55_vm5, %vm59_vm4 }
  0x82   :  { %vm65_vm8 = vmor %vm60_vm7, %vm64_vm6 }
  0x83   :  { %v143_v49 = vsel %vm65_vm8, 1.0, %v196_v48 }
  0x84   :  { %100 = vmatmul.f32.vlgmr.msra.gmra.mxu0 %v143_v49 }
  0x86   :  { %v21_v50 = vpop.permute.xlu1 %20 }
  0x87   :  { %vm22_vm10 = vcmp.eq.s32.totalorder %v21_v50, %v14_v44 }
  0x88   :  { %vm23_vm11 = vmor %vm18_vm9, %vm22_vm10 }
  0x89   :  { %144 = vmatmul.msk.f32.vlgmr.msra.gmra.mxu1 %vm23_vm11, %v197_v51 }
 0x101   :  { %v101_v52 = vpop.f32.mrf.mxu0 }
 0x106   :  { %v121_v53 = vpop.f32.mrf.mxu1 }
 0x107   :  { %v122_v54 = vadd.f32 %v121_v53, %v101_v52 }
 0x109   :  { %125 = vst.msk [vmem:[#allocation2] sm:$0xff] %vm124_vm12, %v122_v54 }
 0x10a   :  { %136 = dma.vmem_to_hbm [thread:$0]  %s132_s0, 128, %s134_s19, [#allocation3]  }
 0x10b   :  { %187 = dma.done.wait [#allocation3], 128  }
 0x10c   :  { %188 = vsyncadd [#allocation3], 4294967168 }
 0x10d   :  { %141 = vsyncpa [#allocation3], 1 }

</bundles_post_ra>
